<compile_context>
chip_gen: v7x
topology: tpu7x:2x2x1
jax: 0.10.0
libtpu: 0.0.40
codegen_flags: <defaults>
</compile_context>

<pallas_src>
import functools

import jax
import jax.numpy as jnp
from jax.experimental import pallas as pl
from jax.experimental.pallas import tpu as pltpu


def _round_up(x, m):
    return (x + m - 1) // m * m


def _cdiv(a, b):
    return (a + b - 1) // b


def _embed_kernel(x_ref, w_ref, pos_ref, o_ref):
    # x_ref:   (bb, tp, K)  bf16 patch rows for `bb` images (or one row-tile of one image)
    # w_ref:   (K, H)       bf16 conv weight, reshaped & transposed (fetched once: const idx)
    # pos_ref: (tp, H)      f32 position embeddings with conv bias pre-folded (resident)
    # o_ref:   (bb, tp, H)  f32 output tile
    w = w_ref[...]
    pos = pos_ref[...]
    # Static unroll over the images packed into this block: each slice is a clean
    # (tp, K) x (K, H) MXU matmul with f32 accumulation.  Dropout: eval mode -> identity.
    for i in range(x_ref.shape[0]):
        y = jnp.dot(x_ref[i], w, preferred_element_type=jnp.float32)
        o_ref[i] = (y + pos).astype(o_ref.dtype)


@functools.partial(jax.jit, static_argnames=("patch_size", "compute_dtype"))
def embeddings_forward(x_nchw, conv_w, conv_b, pos_emb, *, patch_size,
                       compute_dtype=jnp.bfloat16):
    """x_nchw: (B, C, H, W); conv_w: (hidden, C, ph, pw); conv_b: (hidden,);
    pos_emb: (1, P, hidden).  Returns (embeddings (B, P, hidden), None)."""
    B, C, Himg, Wimg = x_nchw.shape
    ph, pw = patch_size
    gh, gw = Himg // ph, Wimg // pw
    P = gh * gw
    hidden = conv_w.shape[0]
    K = C * ph * pw
    out_dtype = x_nchw.dtype

    # K (the contraction dim) must be zero-padded host-side: Pallas OOB input contents are
    # unspecified and would corrupt the matmul if we relied on masking there.
    K_pad = _round_up(K, 128)

    # --- patch extraction (cast to bf16 FIRST, then pure layout ops; XLA may fuse the
    #     layout chain into the pallas_call input DMA via allow_input_fusion) ---
    xq = x_nchw.astype(compute_dtype)
    patches = xq.reshape(B, C, gh, ph, gw, pw)
    patches = patches.transpose(0, 2, 4, 1, 3, 5).reshape(B, P, K)
    if K_pad != K:
        patches = jnp.pad(patches, ((0, 0), (0, 0), (0, K_pad - K)))

    w_t = conv_w.reshape(hidden, K).T.astype(compute_dtype)            # (K, hidden)
    if K_pad != K:
        w_t = jnp.pad(w_t, ((0, K_pad - K), (0, 0)))

    # Fold conv bias into the f32 position embeddings (one VPU add in-kernel, one fewer
    # input stream).
    pos2 = (pos_emb.reshape(P, hidden).astype(jnp.float32)
            + conv_b.astype(jnp.float32)[None, :])

    # --- tiling: fat, lane-dense steps; no output padding/slicing ---
    rows_total = B * P
    tm_target = 512 if rows_total >= 1024 else 256
    P8 = _round_up(P, 8)

    if P8 <= tm_target:
        # Small/medium P: pack `bb` whole images into each grid step.
        tp = P                                  # full-dim block along P (always legal)
        bb = max(1, tm_target // P8)
        bb = min(bb, B)
        if B >= 2:                              # keep >=2 batch steps for v7x's 2 TensorCores
            bb = min(bb, _cdiv(B, 2))
        bb = max(bb, 1)
        grid = (1, _cdiv(B, bb))                # (row_tiles, batch_tiles), batch innermost
    else:
        # Large P: tile rows within one image; 256-multiple rows fill the MXU (v6e/v7x).
        bb = 1
        tp = tm_target                          # 256 or 512
        grid = (_cdiv(P, tp), B)

    in_sz = jnp.dtype(compute_dtype).itemsize
    out_sz = jnp.dtype(out_dtype).itemsize
    flops = 2 * B * P * K_pad * hidden
    bytes_accessed = (B * P * K_pad * in_sz            # patches
                      + K_pad * hidden * in_sz         # weight
                      + P * hidden * 4                 # pos(+bias)
                      + B * P * hidden * out_sz)       # output

    # Double-buffered per-step tiles + (two) weight buffers.
    vmem_est = 2 * (bb * tp * K_pad * in_sz
                    + tp * hidden * 4
                    + bb * tp * hidden * out_sz
                    + K_pad * hidden * in_sz)
    vmem_cap = 48 * 1024 * 1024                        # safe on v7x (64 MiB physical VMEM)
    try:
        vmem_cap = int(pltpu.get_tpu_info().vmem_capacity_bytes * 3 // 4)
    except Exception:
        pass
    vmem_limit = min(max(32 * 1024 * 1024, int(1.5 * vmem_est)), vmem_cap)
    vmem_limit = max(vmem_limit, int(1.25 * vmem_est))  # never starve the pipeline

    out = pl.pallas_call(
        _embed_kernel,
        out_shape=jax.ShapeDtypeStruct((B, P, hidden), out_dtype),
        grid_spec=pltpu.PrefetchScalarGridSpec(
            num_scalar_prefetch=0,
            grid=grid,
            in_specs=[
                pl.BlockSpec((bb, tp, K_pad), lambda r, b: (b, r, 0)),   # patch rows
                pl.BlockSpec((K_pad, hidden), lambda r, b: (0, 0)),      # weight (fetched once)
                pl.BlockSpec((tp, hidden), lambda r, b: (r, 0)),         # pos+bias (resident
                                                                         #  across inner b loop)
            ],
            out_specs=pl.BlockSpec((bb, tp, hidden), lambda r, b: (b, r, 0)),
        ),
        compiler_params=pltpu.CompilerParams(
            dimension_semantics=("parallel", "parallel"),
            vmem_limit_bytes=int(vmem_limit),
            allow_input_fusion=[True, False, False],
        ),
        cost_estimate=pl.CostEstimate(
            flops=int(flops), transcendentals=0, bytes_accessed=int(bytes_accessed)),
    )(patches, w_t, pos2)

    features = None  # non-hybrid path
    return out, features


def _run_and_check(B, C, img, patch, hidden, key):
    ph = pw = patch
    gh, gw = img // ph, img // pw
    P = gh * gw
    K = C * ph * pw

    kx, kw, kb, kp = jax.random.split(key, 4)
    x = jax.random.normal(kx, (B, C, img, img), dtype=jnp.float32)
    conv_w = jax.random.normal(kw, (hidden, C, ph, pw), dtype=jnp.float32) * 0.05
    conv_b = jax.random.normal(kb, (hidden,), dtype=jnp.float32) * 0.05
    # PyTorch inits position_embeddings to zeros; use small random values so the add path
    # is exercised (still deterministic).
    pos_emb = jax.random.normal(kp, (1, P, hidden), dtype=jnp.float32) * 0.02

    emb, feats = embeddings_forward(x, conv_w, conv_b, pos_emb, patch_size=(ph, pw))
    emb = jax.block_until_ready(emb)

    # Pure-JAX reference with the same bf16 input quantization + f32 accumulation as the
    # kernel (bias/pos add in f32, like the kernel epilogue).
    patches_ref = x.reshape(B, C, gh, ph, gw, pw)
    patches_ref = patches_ref.transpose(0, 2, 4, 1, 3, 5).reshape(B, P, K)
    p_bf = patches_ref.astype(jnp.bfloat16).astype(jnp.float32)
    w_bf = conv_w.reshape(hidden, K).astype(jnp.bfloat16).astype(jnp.float32)
    ref = jnp.einsum("bpk,hk->bph", p_bf, w_bf) + conv_b[None, None, :] + pos_emb

    assert emb.shape == (B, P, hidden)
    assert emb.dtype == jnp.float32
    assert feats is None
    err = float(jnp.max(jnp.abs(emb - ref)))
    assert jnp.allclose(emb, ref, atol=2e-3, rtol=2e-3), err


if __name__ == "__main__":
    key = jax.random.PRNGKey(0)
    k1, k2, k3 = jax.random.split(key, 3)

    # (1) Required small config (img=16, patch=4 -> P=16, hidden=32, B=2): one image per
    #     step, 2 grid steps along batch.
    _run_and_check(B=2, C=4, img=16, patch=4, hidden=32, key=k1)

    # (2) Several whole images per step + a partial (masked) trailing batch block,
    #     lane-dense hidden=128.
    _run_and_check(B=3, C=3, img=32, patch=8, hidden=128, key=k2)

    # (3) Large-P path: P=324 > row-tile target -> 256-row tiles within an image with a
    #     partial (masked) trailing row block; pos tile resident across the batch loop.
    _run_and_check(B=2, C=3, img=144, patch=8, hidden=128, key=k3)

    print("KERNEL_OK")
</pallas_src>

<mosaic_0001>
module attributes {stable_mosaic.version = 11 : i64} {
  func.func @_embed_kernel(%arg0: i32, %arg1: i32, %arg2: memref<1x16x128xbf16, #tpu.memory_space<vmem>>, %arg3: memref<128x32xbf16, #tpu.memory_space<vmem>>, %arg4: memref<16x32xf32, #tpu.memory_space<vmem>>, %arg5: memref<1x16x32xf32, #tpu.memory_space<vmem>>) attributes {dimension_semantics = [#tpu.dimension_semantics<parallel>, #tpu.dimension_semantics<parallel>], iteration_bounds = array<i64: 1, 2>, scalar_prefetch = 0 : i64, scratch_operands = 0 : i64, tpu.core_type = #tpu.core_type<tc>, window_params = [{transform_indices = @transform_0, window_bounds = array<i64: 1, 16, 128>}, {pipeline_mode = #tpu.pipeline_mode<synchronous>, transform_indices = @transform_1, window_bounds = array<i64: 128, 32>}, {transform_indices = @transform_2, window_bounds = array<i64: 16, 32>}, {transform_indices = @transform_3, window_bounds = array<i64: 1, 16, 32>}]} {
    %c0 = arith.constant 0 : index
    %c0_0 = arith.constant 0 : index
    %0 = vector.load %arg3[%c0, %c0_0] : memref<128x32xbf16, #tpu.memory_space<vmem>>, vector<128x32xbf16>
    %c0_1 = arith.constant 0 : index
    %c0_2 = arith.constant 0 : index
    %1 = vector.load %arg4[%c0_1, %c0_2] : memref<16x32xf32, #tpu.memory_space<vmem>>, vector<16x32xf32>
    %c0_3 = arith.constant 0 : index
    %c0_4 = arith.constant 0 : index
    %c0_5 = arith.constant 0 : index
    %2 = vector.load %arg2[%c0_3, %c0_4, %c0_5] : memref<1x16x128xbf16, #tpu.memory_space<vmem>>, vector<1x16x128xbf16>
    %3 = vector.shape_cast %2 : vector<1x16x128xbf16> to vector<16x128xbf16>
    %cst = arith.constant dense<0.000000e+00> : vector<16x32xf32>
    %4 = tpu.matmul %3, %0, %cst {dimension_numbers = #tpu.dot_dimension_numbers<[1], [0], [0], [1], [0, 0, 1, 1], [], []>} : vector<16x128xbf16>, vector<128x32xbf16>, vector<16x32xf32> -> vector<16x32xf32>
    %5 = arith.addf %4, %1 : vector<16x32xf32>
    %c0_6 = arith.constant 0 : index
    %c0_7 = arith.constant 0 : index
    %c0_8 = arith.constant 0 : index
    %6 = vector.load %arg5[%c0_6, %c0_7, %c0_8] : memref<1x16x32xf32, #tpu.memory_space<vmem>>, vector<1x16x32xf32>
    %7 = vector.shape_cast %6 : vector<1x16x32xf32> to vector<16x32xf32>
    %8 = vector.shape_cast %5 : vector<16x32xf32> to vector<1x16x32xf32>
    tpu.vector_store %arg5[%c0_6, %c0_7, %c0_8], %8 {strides = array<i32>} : memref<1x16x32xf32, #tpu.memory_space<vmem>>, vector<1x16x32xf32>,
    return
  }
  func.func @transform_0(%arg0: i32, %arg1: i32) -> (i32, i32, i32) {
    %c0_i32 = arith.constant 0 : i32
    %c0_i32_0 = arith.constant 0 : i32
    return %arg1, %arg0, %c0_i32 : i32, i32, i32
  }
  func.func @transform_1(%arg0: i32, %arg1: i32) -> (i32, i32) {
    %c0_i32 = arith.constant 0 : i32
    %c0_i32_0 = arith.constant 0 : i32
    %c0_i32_1 = arith.constant 0 : i32
    return %c0_i32, %c0_i32_0 : i32, i32
  }
  func.func @transform_2(%arg0: i32, %arg1: i32) -> (i32, i32) {
    %c0_i32 = arith.constant 0 : i32
    %c0_i32_0 = arith.constant 0 : i32
    return %arg0, %c0_i32 : i32, i32
  }
  func.func @transform_3(%arg0: i32, %arg1: i32) -> (i32, i32, i32) {
    %c0_i32 = arith.constant 0 : i32
    %c0_i32_0 = arith.constant 0 : i32
    return %arg1, %arg0, %c0_i32 : i32, i32, i32
  }
}

</mosaic_0001>

<bundles_post_ra>
// kernel: embeddings_forward.2
= control target key start
LH: loop header
LB: loop body
LE: loop exit
PB: predicated region body
PF: predicated region fallthrough
CT: control target
= control target key end

     0   :  { %s884_s0 = inlined_call_operand.vmem [shape: bf16[128,32], index: 0, kind: input, shape index: {}]   ;;  %s885_s1 = inlined_call_operand.vmem [shape: f32[16,32], index: 1, kind: input, shape index: {}]   ;;  %s886_s2 = inlined_call_operand.vmem [shape: bf16[2,16,64], index: 2, kind: input, shape index: {}]   ;;  %s887_s3 = inlined_call_operand.<no memory space> [shape: bf16[], index: 3, kind: input, shape index: {}]   ;;  %s888_s4 = inlined_call_operand.hbm [shape: f32[2,16,32], index: 4, kind: output, shape index: {}]  }
   0x1   :  { %v9_v0 = vstv %s887_s3 }
   0x2   :  { %v735_v1 = vunpack.i.l.bf16 %v9_v0 }
   0x3   :  { %14 = vsyncpa [#allocation8], 0 }
   0x4   :  { %16 = vsyncpa [#allocation8 + $0x1], 0  ;;  %s737_s17 = smov 0   ;;  %s739_s18 = smov 0  }
   0x5   :  { %s741_s19 = smov 0   ;;  %s743_s20 = smov 0  }
   0x6   :  { %s745_s21 = smov 0   ;;  %s747_s22 = smov 0  }
   0x7 LB: > { %s499_s3 = sadd.s32 4294967295, %s700_s22   ;;  %s500_s23 = sadd.s32 4294967294, %s700_s22   ;;  %s700_s22 = sphi %s747_s22, %s22_s22   ;;  %s696_s21 = sphi %s745_s21, %s895_s21   ;;  %s692_s20 = sphi %s743_s20, %s894_s20   ;;  %s688_s19 = sphi %s741_s19, %s893_s19   ;;  %s684_s18 = sphi %s739_s18, %s892_s18   ;;  %s680_s17 = sphi %s737_s17, %s891_s17  }
   0x8   : > { %s31_s24 = sadd.s32 1, %s696_s21  ;;  %s118_s25 = sadd.s32 1, %s688_s19 }
   0x9   : > { %p32_p0 = scmp.ge.s32.totalorder %s31_s24, 2  ;;  %p128_p1 = scmp.ne.s32.totalorder %s688_s19, %s684_s18 }
   0xa   : > { %p129_p2 = scmp.eq.s32.totalorder %s499_s3, 1  ;;  %p134_p3 = scmp.ne.s32.totalorder %s684_s18, %s680_s17 }
   0xb   : > { %s897_s24 = smov (%p32_p0, %s31_s24), 0  ;;  %p135_p5 = scmp.eq.s32.totalorder %s500_s23, 1 }
   0xc   : > { %p777_p4 = por %p129_p2, %p128_p1  ;;  %s113_s27 = ssub.s32 %s696_s21, %s897_s24 }
   0xd   : > { %p504_p6 = scmp.ge.s32.totalorder %s700_s22, 1  ;;  %p116_p7 = scmp.eq.s32.totalorder %s113_s27, 0 }
   0xe   : > { %p784_p8 = por %p135_p5, %p134_p3  ;;  %p178_p9 = scmp.lt.s32.totalorder %s700_s22, 3 }
   0xf   : > { %s790_s29 = scalar_select %p116_p7, %s688_s19, %s118_s25  }
  0x10   : > { %p179_p10 = pnand %p504_p6, %p178_p9 }
  0x12   : > { %182 = sbr.rel (%p179_p10) target bundleno = 289 (0x121), region = 32 }
  0x19   : > { %v613_v2 = vld [vmem:[%s884_s0] sm:$0xff]   ;;  %v240_v3 = vlaneseq  ;;  %v702_v4 = vmov 0.0   ;;  %v614_v5 = vld [vmem:[%s884_s0 + $0x8] sm:$0xff]   ;;  %vm703_vm0 = vmmov 0   ;;  %p212_p11 = scmp.lt.s32.totalorder %s692_s20, 1  ;;  %v615_v7 = vld [vmem:[%s884_s0 + $0x10] sm:$0xff]  }
  0x1a   : > { %534 = vmatprep.subr.bf16.mxu0 %v702_v4  ;;  %550 = vmatprep.mubr.msk.bf16.mxu0 %vm703_vm0, %v702_v4  ;;  %v616_v11 = vld [vmem:[%s884_s0 + $0x18] sm:$0xff]   ;;  %v617_v16 = vld [vmem:[%s884_s0 + $0x20] sm:$0xff]   ;;  %v618_v17 = vld [vmem:[%s884_s0 + $0x28] sm:$0xff]   ;;  %vm386_vm2 = vcmask 261120   ;;  %s704_s30 = smov [#allocation7]  }
  0x1b   : > { %535 = vmatpush3.bf16.msra.mxu0 %v613_v2  ;;  %s213_s8 = scalar_select %p212_p11, %s692_s20, 1  ;;  %v241_v6 = vand.u32 127, %v240_v3  ;;  %v619_v18 = vld [vmem:[%s884_s0 + $0x30] sm:$0xff]   ;;  %v620_v19 = vld [vmem:[%s884_s0 + $0x38] sm:$0xff]   ;;  %v287_v21 = vld [vmem:[%s885_s1] sm:$0xff] }
  0x1c   : > { %536 = vmatprep.subr.bf16.mxu0 %v702_v4  ;;  %v288_v23 = vld [vmem:[%s885_s1 + $0x8] sm:$0xff]  ;;  %s626_s5 = sshll.u32 %s704_s30, 4  ;;  %s627_s5 = int_to_ptr.vmem [resolvable:$false] %s626_s5 }
  0x1d   : > { %s523_s11 = sshll.u32 %s213_s8, 3  ;;  %vm243_vm1 = vcmp.lt.s32.totalorder %v241_v6, 64  ;;  %s208_s8 = sand.u32 1, %s684_s18  }
  0x1e   : > { %s219_s14 = scalar_lea.vmem %s886_s2, %s523_s11  ;;  %s505_s9 = sshll.u32 %s208_s8, 4 }
  0x1f   : > { %537 = vmatpush3.bf16.msra.mxu0 %v614_v5  ;;  %v237_v8 = vld [vmem:[%s219_s14] sm:$0xff]   ;;  %s210_s12 = scalar_lea.vmem [#allocation7], %s505_s9  ;;  %s524_s14 = sshll.u32 %s692_s20, 8 }
  0x20   : > { %538 = vmatprep.subr.bf16.mxu0 %v702_v4  ;;  %v238_v9 = vunpack.c.l.bf16 %v237_v8  ;;  %v259_v10 = vunpack.c.h.bf16 %v237_v8  ;;  %s405_s13 = sshll.u32 %s210_s12, 4  ;;  %s836_s25 = scalar_lea.hbm %s888_s4, %s524_s14  ;;  %s831_s13 = int_to_ptr.vmem [resolvable:$true] %s405_s13 }
  0x21   : > { %s838_s20 = scalar_lea.sflag [#allocation8], %s208_s8  ;;  %s622_s27 = scalar_lea.vmem %s831_s13, 256 }
  0x22   : > { %v244_v12 = vsel %vm243_vm1, %v238_v9, %v735_v1  ;;  %v265_v13 = vsel %vm243_vm1, %v259_v10, %v735_v1  ;;  %p623_p12 = scmp.ne.s32.totalorder %s831_s13, %s622_s27  ;;  %s628_s6 = scalar_lea.vmem %s627_s5, 512 }
  0x23   : > { %539 = vmatpush3.bf16.msra.mxu0 %v615_v7  ;;  %v245_v14 = vpack.c.bf16 %v702_v4, %v244_v12  ;;  %v267_v15 = vpack.c.bf16 %v702_v4, %v265_v13  ;;  %p629_p1 = scmp.lt.s32.totalorder %s831_s13, %s627_s5  ;;  %p630_p2 = scmp.lt.s32.totalorder %s628_s6, %s622_s27 }
  0x24   : > { %540 = vmatprep.subr.bf16.mxu0 %v702_v4  ;;  %p624_p13 = pnand %p623_p12, %p777_p4 }
  0x25   : > { %247 = vst [vmem:[#allocation9] sm:$0xf] %v245_v14  ;;  %269 = vst [vmem:[#allocation9 + $0x4] sm:$0xf] %v267_v15  ;;  %p631_p3 = por %p630_p2, %p629_p1 }
  0x26   : > { %p625_p0 = pneg %p624_p13 }
  0x27   : > { %541 = vmatpush3.bf16.msra.mxu0 %v616_v11 }
  0x28   : > { %542 = vmatprep.subr.bf16.mxu0 %v702_v4  ;;  %p632_p5 = pnand %p631_p3, %p625_p0 }
  0x2b   : > { %543 = vmatpush3.bf16.msra.mxu0 %v617_v16 }
  0x2c   : > { %544 = vmatprep.subr.bf16.mxu0 %v702_v4  ;;  %v621_v20 = vld [vmem:[#allocation9] sm:$0xff]  }
  0x2f   : > { %545 = vmatpush3.bf16.msra.mxu0 %v618_v17 }
  0x30   : > { %546 = vmatprep.subr.bf16.mxu0 %v702_v4 }
  0x33   : > { %547 = vmatpush3.bf16.msra.mxu0 %v619_v18 }
  0x34   : > { %548 = vmatprep.subr.bf16.mxu0 %v702_v4 }
  0x37   : > { %549 = vmatpush3.bf16.msra.mxu0 %v620_v19 }
  0x3a   : > { %551 = vmatmul.mubr.bf16.vlgmr.msra.gmra.mrb[0].mxu0 %v621_v20 }
 0x10d   : > { %v379_v22 = vpop.f32.mrb[0].mxu0 }
 0x10e   : > { %v380_v24 = vadd.f32 %v379_v22, %v287_v21  ;;  %v552_v25 = vpop.f32.mrb[1].mxu0 }
 0x10f   : > { %v382_v26 = vpop.f32.mrb[2].mxu0 }
 0x110   : > { %387 = vst.msk [vmem:[%s210_s12] sm:$0xff] %vm386_vm2, %v380_v24  ;;  %v383_v27 = vadd.f32 %v382_v26, %v288_v23  ;;  %v553_v28 = vpop.f32.mrb[3].mxu0 }
 0x112   : > { %388 = vst.msk [vmem:[%s210_s12 + $0x8] sm:$0xff] %vm386_vm2, %v383_v27 }
 0x113   : > { %635 = shalt.err (!%p632_p5)
}
 0x114   : > { %s636_s7 = scalar_lea.hbm %s836_s25, 256  ;;  %s640_s10 = scalar_lea.hbm %s888_s4, 512 }
 0x115   : > { %p637_p6 = scmp.ne.s32.totalorder %s836_s25, %s636_s7  ;;  %p641_p10 = scmp.lt.u32.totalorder %s836_s25, %s888_s4 }
 0x116   : > { %p642_p11 = scmp.lt.u32.totalorder %s640_s10, %s636_s7  ;;  %p644_p13 = scmp.lt.u32.totalorder %s636_s7, %s836_s25 }
 0x117   : > { %p638_p7 = pnand %p637_p6, %p777_p4 }
 0x118   : > { %p643_p12 = por %p642_p11, %p641_p10 }
 0x119   : > { %p639_p9 = pneg %p638_p7 }
 0x11a   : > { %p645_p0 = por %p644_p13, %p643_p12 }
 0x11c   : > { %p646_p1 = pnand %p645_p0, %p639_p9 }
 0x11e   : > { %649 = shalt.err (!%p646_p1)
}
 0x11f   : > { %s705_s14 = smov 128   ;;  %s706_s15 = smov 8  }
 0x120   : > { %554 = dma.vmem_to_hbm [thread:$0]  (%p777_p4), %s831_s13, 256, %s836_s25, %s838_s20, %s705_s14, %s705_s14, %s706_s15  }
 0x121 PF: > { %p560_p2 = scmp.ge.s32.totalorder %s700_s22, 2  ;;  %s420_s16 = sand.u32 1, %s680_s17  }
 0x122   : > { %s421_s3 = scalar_lea.sflag [#allocation8], %s420_s16 }
 0x123   : > { %p557_p3 = pnand %p560_p2, %p784_p8 }
 0x125   : > { %675 = dma.done.wait (!%p557_p3), %s421_s3, 256  }
 0x126   : > { %677 = vsyncadd (!%p557_p3), %s421_s3, 4294967040  ;;  %s22_s22 = sadd.s32 1, %s700_s22   ;;  %s891_s17 = smov %s684_s18 }
 0x127   : > { %p19_p5 = scmp.ge.s32.totalorder %s22_s22, 4   ;;  %s892_s18 = smov %s688_s19 }
 0x128   : > { %s893_s19 = smov %s790_s29  ;;  %s894_s20 = smov %s696_s21 }
 0x129   : > { %s895_s21 = smov %s897_s24  ;;  %21 = sbr.rel (!%p19_p5) target bundleno = 7 (0x7), region = 72 }
 0x130   :  { %426 = vsyncpa [#allocation8], 1 }
 0x131   :  { %428 = vsyncpa [#allocation8 + $0x1], 1 }

</bundles_post_ra>
